<compile_context>
chip_gen: v5e
topology: v5e:2x2
jax: 0.10.0
libtpu: 0.0.40
codegen_flags: <defaults>
</compile_context>

<pallas_src>
import jax
import jax.numpy as jnp
from jax.experimental import pallas as pl
from jax.experimental.pallas import tpu as pltpu

LN_EPS = 1e-5          # torch.nn.LayerNorm default
LEAKY_SLOPE = 0.01     # torch.nn.LeakyReLU default


def _layernorm(h, gamma, beta):
    """LayerNorm with fused single-pass statistics (sum and sum-of-squares)."""
    inv_d = 1.0 / h.shape[-1]
    s1 = jnp.sum(h, axis=-1, keepdims=True)
    s2 = jnp.sum(h * h, axis=-1, keepdims=True)
    mu = s1 * inv_d
    var = s2 * inv_d - mu * mu
    return (h - mu) * jax.lax.rsqrt(var + LN_EPS) * gamma + beta


def _leaky_relu(h):
    return jnp.where(h > 0, h, LEAKY_SLOPE * h)


def beta_vae_kernel(
    # inputs
    x_ref, eps_ref,
    w1_ref, b1_ref, g1_ref, be1_ref,          # encoder Linear1 + LayerNorm
    w2_ref, b2_ref,                           # encoder Linear2 (fused mean|log_var, padded)
    w3_ref, b3_ref, g2_ref, be2_ref,          # decoder Linear1 + LayerNorm
    w4_ref, b4_ref,                           # decoder Linear2
    # outputs
    recon_ref, mlv_ref,
):
    # ---- encoder ----
    # x and all w* are already bf16; MXU accumulates in f32, bias add in f32.
    h = jnp.dot(x_ref[...], w1_ref[...],
                preferred_element_type=jnp.float32) + b1_ref[...]
    h = _leaky_relu(_layernorm(h, g1_ref[...], be1_ref[...]))

    # Fused mean|log_var projection -> lane-dense [TB, 2*latent_pad] store.
    mlv = jnp.dot(h.astype(jnp.bfloat16), w2_ref[...],
                  preferred_element_type=jnp.float32) + b2_ref[...]
    mlv_ref[...] = mlv

    # ---- reparameterization (eps ~ N(0,1) from the host; padded cols are 0) ----
    lp = mlv.shape[-1] // 2
    mean = mlv[:, :lp]
    log_var = mlv[:, lp:]
    z = mean + eps_ref[...] * jnp.exp(0.5 * log_var)

    # ---- decoder ----
    d = jnp.dot(z.astype(jnp.bfloat16), w3_ref[...],
                preferred_element_type=jnp.float32) + b3_ref[...]
    d = _leaky_relu(_layernorm(d, g2_ref[...], be2_ref[...]))
    recon_ref[...] = jnp.dot(d.astype(jnp.bfloat16), w4_ref[...],
                             preferred_element_type=jnp.float32) + b4_ref[...]


def _round_up(n, m):
    return ((n + m - 1) // m) * m


def _choose_batch_tiling(B):
    """Row tile + padded batch: >= 2 grid steps when B allows (v7x megacore),
    TB capped at 256 (MXU M dimension), always a multiple of 8."""
    b8 = _round_up(B, 8)
    if b8 >= 512:
        tb = 256
    elif b8 >= 16:
        tb = _round_up((b8 + 1) // 2, 8)     # two row tiles
    else:
        tb = b8                              # tiny batch: one tile
    return tb, _round_up(b8, tb)


def _nbytes(a):
    return int(a.size) * int(jnp.dtype(a.dtype).itemsize)


@jax.jit
def beta_vae_forward(x, eps, params):
    """VAE forward; batch-gridded with single-buffered VMEM-resident bf16 weights."""
    B, input_dim = x.shape
    intermediate_dim = params["w1"].shape[1]
    latent_dim = params["w3"].shape[0]

    latent_pad = _round_up(latent_dim, 128)
    two_latent_pad = 2 * latent_pad
    TB, B_pad = _choose_batch_tiling(B)
    grid = (B_pad // TB,)

    f32, bf16 = jnp.float32, jnp.bfloat16

    # ---- wrapper-side prep: pad batch & latent, pre-cast weights to bf16 ----
    xp = jnp.zeros((B_pad, input_dim), bf16).at[:B].set(x.astype(bf16))
    epsp = jnp.zeros((B_pad, latent_pad), f32).at[:B, :latent_dim].set(eps)

    w1 = params["w1"].astype(bf16)
    w4 = params["w4"].astype(bf16)

    # Fused mean|log_var projection with each half 128-lane aligned.
    w2p = jnp.zeros((intermediate_dim, two_latent_pad), f32)
    w2p = w2p.at[:, :latent_dim].set(params["w2"][:, :latent_dim])
    w2p = w2p.at[:, latent_pad:latent_pad + latent_dim].set(params["w2"][:, latent_dim:])
    w2p = w2p.astype(bf16)
    b2p = jnp.zeros((1, two_latent_pad), f32)
    b2p = b2p.at[:, :latent_dim].set(params["b2"][:, :latent_dim])
    b2p = b2p.at[:, latent_pad:latent_pad + latent_dim].set(params["b2"][:, latent_dim:])

    # Decoder input projection: zero-pad the K (latent) rows.
    w3p = jnp.zeros((latent_pad, intermediate_dim), f32)
    w3p = w3p.at[:latent_dim].set(params["w3"]).astype(bf16)

    b1, g1, be1 = params["b1"], params["g1"], params["be1"]
    b3, g2, be2 = params["b3"], params["g2"], params["be2"]
    b4 = params["b4"]

    # ---- BlockSpecs ----
    def row_spec(cols):
        return pl.BlockSpec((TB, cols), lambda i: (i, 0))

    def resident_spec(arr):
        # Constant block index -> DMA'd once, single VMEM buffer.
        return pl.BlockSpec(arr.shape, lambda i: (0, 0),
                            pipeline_mode=pl.Buffered(1))

    in_specs = [
        row_spec(input_dim),       # x (bf16)
        row_spec(latent_pad),      # eps (f32)
        resident_spec(w1), resident_spec(b1), resident_spec(g1), resident_spec(be1),
        resident_spec(w2p), resident_spec(b2p),
        resident_spec(w3p), resident_spec(b3), resident_spec(g2), resident_spec(be2),
        resident_spec(w4), resident_spec(b4),
    ]
    out_specs = (
        row_spec(input_dim),       # recon (f32)
        row_spec(two_latent_pad),  # fused mean|log_var (f32, lane-dense)
    )

    # ---- VMEM budget (explicit limit, ~30% headroom) ----
    resident_bytes = sum(_nbytes(a) for a in
                         (w1, b1, g1, be1, w2p, b2p, w3p, b3, g2, be2, w4, b4))
    stream_bytes = 2 * (TB * input_dim * 2      # x tile (bf16), double-buffered
                        + TB * latent_pad * 4   # eps tile
                        + TB * input_dim * 4    # recon tile
                        + TB * two_latent_pad * 4)  # mlv tile
    act_bytes = 8 * TB * max(intermediate_dim, input_dim, two_latent_pad) * 4
    vmem_limit = int(1.3 * (resident_bytes + stream_bytes + act_bytes)) + (2 << 20)
    vmem_limit = max(min(vmem_limit, 64 << 20), 8 << 20)   # stay under v7x physical

    # ---- cost estimate (advisory) ----
    flops = 2 * B_pad * (input_dim * intermediate_dim
                         + intermediate_dim * two_latent_pad
                         + latent_pad * intermediate_dim
                         + intermediate_dim * input_dim)
    transcendentals = B_pad * (latent_pad + 2)   # exp per latent element, rsqrt per row x2
    bytes_accessed = (_nbytes(xp) + _nbytes(epsp) + resident_bytes
                      + B_pad * input_dim * 4 + B_pad * two_latent_pad * 4)

    recon_p, mlv_p = pl.pallas_call(
        beta_vae_kernel,
        out_shape=(
            jax.ShapeDtypeStruct((B_pad, input_dim), f32),
            jax.ShapeDtypeStruct((B_pad, two_latent_pad), f32),
        ),
        grid=grid,
        in_specs=in_specs,
        out_specs=out_specs,
        compiler_params=pltpu.CompilerParams(
            dimension_semantics=("parallel",),
            vmem_limit_bytes=vmem_limit),
        cost_estimate=pl.CostEstimate(
            flops=int(flops),
            transcendentals=int(transcendentals),
            bytes_accessed=int(bytes_accessed)),
    )(xp, epsp,
      w1, b1, g1, be1,
      w2p, b2p,
      w3p, b3, g2, be2,
      w4, b4)

    # Strip batch/latent padding; torch.chunk(x, 2, dim=-1) done here (free slices).
    recon = recon_p[:B]
    mean = mlv_p[:B, :latent_dim]
    log_var = mlv_p[:B, latent_pad:latent_pad + latent_dim]
    return recon, mean, log_var


def make_params(key, input_dim, intermediate_dim, latent_dim):
    """Deterministic synthetic parameters (shapes match the nn.Module __init__)."""
    ks = jax.random.split(key, 4)
    scale = 0.05

    def lin(k, fan_in, fan_out):
        kw, kb = jax.random.split(k)
        w = jax.random.normal(kw, (fan_in, fan_out), jnp.float32) * scale
        b = jax.random.normal(kb, (1, fan_out), jnp.float32) * scale
        return w, b

    w1, b1 = lin(ks[0], input_dim, intermediate_dim)
    w2, b2 = lin(ks[1], intermediate_dim, 2 * latent_dim)   # fused mean|log_var
    w3, b3 = lin(ks[2], latent_dim, intermediate_dim)
    w4, b4 = lin(ks[3], intermediate_dim, input_dim)

    g1 = jnp.ones((1, intermediate_dim), jnp.float32)
    be1 = jnp.zeros((1, intermediate_dim), jnp.float32)
    g2 = jnp.ones((1, intermediate_dim), jnp.float32)
    be2 = jnp.zeros((1, intermediate_dim), jnp.float32)

    return dict(
        w1=w1, b1=b1, g1=g1, be1=be1,
        w2=w2, b2=b2,
        w3=w3, b3=b3, g2=g2, be2=be2,
        w4=w4, b4=b4,
    )


def reference_forward(x, eps, params):
    """Pure-JAX reference mirroring the kernel's bf16-matmul / f32-elementwise split."""
    latent_dim = params["w3"].shape[0]
    bf16, f32 = jnp.bfloat16, jnp.float32

    def mm(a, w, b):
        return jnp.dot(a.astype(bf16), w.astype(bf16),
                       preferred_element_type=f32) + b

    h = _leaky_relu(_layernorm(mm(x, params["w1"], params["b1"]),
                               params["g1"], params["be1"]))
    mlv = mm(h, params["w2"], params["b2"])
    mean, log_var = mlv[:, :latent_dim], mlv[:, latent_dim:]
    z = mean + eps * jnp.exp(0.5 * log_var)
    d = _leaky_relu(_layernorm(mm(z, params["w3"], params["b3"]),
                               params["g2"], params["be2"]))
    return mm(d, params["w4"], params["b4"]), mean, log_var


if __name__ == "__main__":
    B, INPUT_DIM, INTERMEDIATE_DIM, LATENT_DIM = 8, 256, 128, 64

    key = jax.random.PRNGKey(0)
    kx, keps, kp = jax.random.split(key, 3)

    x = jax.random.normal(kx, (B, INPUT_DIM), jnp.float32)
    eps = jax.random.normal(keps, (B, LATENT_DIM), jnp.float32)  # torch.randn_like(std)
    params = make_params(kp, INPUT_DIM, INTERMEDIATE_DIM, LATENT_DIM)

    recon, mean, log_var = beta_vae_forward(x, eps, params)
    jax.block_until_ready((recon, mean, log_var))

    r_ref, m_ref, lv_ref = reference_forward(x, eps, params)
    assert recon.shape == (B, INPUT_DIM)
    assert mean.shape == (B, LATENT_DIM) and log_var.shape == (B, LATENT_DIM)
    assert jnp.allclose(recon, r_ref, atol=1e-2, rtol=1e-2)
    assert jnp.allclose(mean, m_ref, atol=1e-2, rtol=1e-2)
    assert jnp.allclose(log_var, lv_ref, atol=1e-2, rtol=1e-2)

    print("KERNEL_OK")
</pallas_src>

<mosaic_0001>
module attributes {stable_mosaic.version = 11 : i64} {
  func.func @beta_vae_kernel(%arg0: i32, %arg1: memref<8x256xbf16, #tpu.memory_space<vmem>>, %arg2: memref<8x128xf32, #tpu.memory_space<vmem>>, %arg3: memref<256x128xbf16, #tpu.memory_space<vmem>>, %arg4: memref<1x128xf32, #tpu.memory_space<vmem>>, %arg5: memref<1x128xf32, #tpu.memory_space<vmem>>, %arg6: memref<1x128xf32, #tpu.memory_space<vmem>>, %arg7: memref<128x256xbf16, #tpu.memory_space<vmem>>, %arg8: memref<1x256xf32, #tpu.memory_space<vmem>>, %arg9: memref<128x128xbf16, #tpu.memory_space<vmem>>, %arg10: memref<1x128xf32, #tpu.memory_space<vmem>>, %arg11: memref<1x128xf32, #tpu.memory_space<vmem>>, %arg12: memref<1x128xf32, #tpu.memory_space<vmem>>, %arg13: memref<128x256xbf16, #tpu.memory_space<vmem>>, %arg14: memref<1x256xf32, #tpu.memory_space<vmem>>, %arg15: memref<8x256xf32, #tpu.memory_space<vmem>>, %arg16: memref<8x256xf32, #tpu.memory_space<vmem>>) attributes {dimension_semantics = [#tpu.dimension_semantics<parallel>], iteration_bounds = array<i64: 1>, scalar_prefetch = 0 : i64, scratch_operands = 0 : i64, tpu.core_type = #tpu.core_type<tc>, window_params = [{transform_indices = @transform_0, window_bounds = array<i64: 8, 256>}, {transform_indices = @transform_1, window_bounds = array<i64: 8, 128>}, {pipeline_mode = #tpu.pipeline_mode<synchronous>, transform_indices = @transform_2, window_bounds = array<i64: 256, 128>}, {pipeline_mode = #tpu.pipeline_mode<synchronous>, transform_indices = @transform_3, window_bounds = array<i64: 1, 128>}, {pipeline_mode = #tpu.pipeline_mode<synchronous>, transform_indices = @transform_4, window_bounds = array<i64: 1, 128>}, {pipeline_mode = #tpu.pipeline_mode<synchronous>, transform_indices = @transform_5, window_bounds = array<i64: 1, 128>}, {pipeline_mode = #tpu.pipeline_mode<synchronous>, transform_indices = @transform_6, window_bounds = array<i64: 128, 256>}, {pipeline_mode = #tpu.pipeline_mode<synchronous>, transform_indices = @transform_7, window_bounds = array<i64: 1, 256>}, {pipeline_mode = #tpu.pipeline_mode<synchronous>, transform_indices = @transform_8, window_bounds = array<i64: 128, 128>}, {pipeline_mode = #tpu.pipeline_mode<synchronous>, transform_indices = @transform_9, window_bounds = array<i64: 1, 128>}, {pipeline_mode = #tpu.pipeline_mode<synchronous>, transform_indices = @transform_10, window_bounds = array<i64: 1, 128>}, {pipeline_mode = #tpu.pipeline_mode<synchronous>, transform_indices = @transform_11, window_bounds = array<i64: 1, 128>}, {pipeline_mode = #tpu.pipeline_mode<synchronous>, transform_indices = @transform_12, window_bounds = array<i64: 128, 256>}, {pipeline_mode = #tpu.pipeline_mode<synchronous>, transform_indices = @transform_13, window_bounds = array<i64: 1, 256>}, {transform_indices = @transform_14, window_bounds = array<i64: 8, 256>}, {transform_indices = @transform_15, window_bounds = array<i64: 8, 256>}]} {
    %c0 = arith.constant 0 : index
    %c0_0 = arith.constant 0 : index
    %0 = vector.load %arg1[%c0, %c0_0] : memref<8x256xbf16, #tpu.memory_space<vmem>>, vector<8x256xbf16>
    %c0_1 = arith.constant 0 : index
    %c0_2 = arith.constant 0 : index
    %1 = vector.load %arg3[%c0_1, %c0_2] : memref<256x128xbf16, #tpu.memory_space<vmem>>, vector<256x128xbf16>
    %cst = arith.constant dense<0.000000e+00> : vector<8x128xf32>
    %2 = tpu.matmul %0, %1, %cst {dimension_numbers = #tpu.dot_dimension_numbers<[1], [0], [0], [1], [0, 0, 1, 1], [], []>} : vector<8x256xbf16>, vector<256x128xbf16>, vector<8x128xf32> -> vector<8x128xf32>
    %c0_3 = arith.constant 0 : index
    %c0_4 = arith.constant 0 : index
    %3 = vector.load %arg4[%c0_3, %c0_4] : memref<1x128xf32, #tpu.memory_space<vmem>>, vector<1x128xf32>
    %4 = vector.broadcast %3 : vector<1x128xf32> to vector<8x128xf32>
    %5 = arith.addf %2, %4 : vector<8x128xf32>
    %c0_5 = arith.constant 0 : index
    %c0_6 = arith.constant 0 : index
    %6 = vector.load %arg5[%c0_5, %c0_6] : memref<1x128xf32, #tpu.memory_space<vmem>>, vector<1x128xf32>
    %c0_7 = arith.constant 0 : index
    %c0_8 = arith.constant 0 : index
    %7 = vector.load %arg6[%c0_7, %c0_8] : memref<1x128xf32, #tpu.memory_space<vmem>>, vector<1x128xf32>
    %cst_9 = arith.constant dense<0.000000e+00> : vector<8xf32>
    %8 = vector.multi_reduction <add>, %5, %cst_9 [1] : vector<8x128xf32> to vector<8xf32>
    %9 = vector.shape_cast %8 : vector<8xf32> to vector<8x1xf32>
    %10 = arith.mulf %5, %5 : vector<8x128xf32>
    %cst_10 = arith.constant dense<0.000000e+00> : vector<8xf32>
    %11 = vector.multi_reduction <add>, %10, %cst_10 [1] : vector<8x128xf32> to vector<8xf32>
    %12 = vector.shape_cast %11 : vector<8xf32> to vector<8x1xf32>
    %cst_11 = arith.constant 7.812500e-03 : f32
    %13 = vector.broadcast %cst_11 : f32 to vector<8x1xf32>
    %14 = arith.mulf %9, %13 : vector<8x1xf32>
    %cst_12 = arith.constant 7.812500e-03 : f32
    %15 = vector.broadcast %cst_12 : f32 to vector<8x1xf32>
    %16 = arith.mulf %12, %15 : vector<8x1xf32>
    %17 = arith.mulf %14, %14 : vector<8x1xf32>
    %18 = arith.subf %16, %17 : vector<8x1xf32>
    %19 = vector.broadcast %14 : vector<8x1xf32> to vector<8x128xf32>
    %20 = arith.subf %5, %19 : vector<8x128xf32>
    %cst_13 = arith.constant 9.99999974E-6 : f32
    %21 = vector.broadcast %cst_13 : f32 to vector<8x1xf32>
    %22 = arith.addf %18, %21 : vector<8x1xf32>
    %23 = math.rsqrt %22 : vector<8x1xf32>
    %24 = vector.broadcast %23 : vector<8x1xf32> to vector<8x128xf32>
    %25 = arith.mulf %20, %24 : vector<8x128xf32>
    %26 = vector.broadcast %6 : vector<1x128xf32> to vector<8x128xf32>
    %27 = arith.mulf %25, %26 : vector<8x128xf32>
    %28 = vector.broadcast %7 : vector<1x128xf32> to vector<8x128xf32>
    %29 = arith.addf %27, %28 : vector<8x128xf32>
    %cst_14 = arith.constant 0.000000e+00 : f32
    %30 = vector.broadcast %cst_14 : f32 to vector<8x128xf32>
    %31 = arith.cmpf ogt, %29, %30 : vector<8x128xf32>
    %cst_15 = arith.constant 0.00999999977 : f32
    %32 = vector.broadcast %cst_15 : f32 to vector<8x128xf32>
    %33 = arith.mulf %32, %29 : vector<8x128xf32>
    %34 = arith.select %31, %29, %33 : vector<8x128xi1>, vector<8x128xf32>
    %35 = arith.truncf %34 : vector<8x128xf32> to vector<8x128xbf16>
    %c0_16 = arith.constant 0 : index
    %c0_17 = arith.constant 0 : index
    %36 = vector.load %arg7[%c0_16, %c0_17] : memref<128x256xbf16, #tpu.memory_space<vmem>>, vector<128x256xbf16>
    %cst_18 = arith.constant dense<0.000000e+00> : vector<8x256xf32>
    %37 = tpu.matmul %35, %36, %cst_18 {dimension_numbers = #tpu.dot_dimension_numbers<[1], [0], [0], [1], [0, 0, 1, 1], [], []>} : vector<8x128xbf16>, vector<128x256xbf16>, vector<8x256xf32> -> vector<8x256xf32>
    %c0_19 = arith.constant 0 : index
    %c0_20 = arith.constant 0 : index
    %38 = vector.load %arg8[%c0_19, %c0_20] : memref<1x256xf32, #tpu.memory_space<vmem>>, vector<1x256xf32>
    %39 = vector.broadcast %38 : vector<1x256xf32> to vector<8x256xf32>
    %40 = arith.addf %37, %39 : vector<8x256xf32>
    %c0_21 = arith.constant 0 : index
    %c0_22 = arith.constant 0 : index
    %41 = vector.load %arg16[%c0_21, %c0_22] : memref<8x256xf32, #tpu.memory_space<vmem>>, vector<8x256xf32>
    tpu.vector_store %arg16[%c0_21, %c0_22], %40 {strides = array<i32>} : memref<8x256xf32, #tpu.memory_space<vmem>>, vector<8x256xf32>,
    %42 = vector.extract_strided_slice %40 {offsets = [0, 0], sizes = [8, 128], strides = [1, 1]} : vector<8x256xf32> to vector<8x128xf32>
    %43 = vector.extract_strided_slice %40 {offsets = [0, 128], sizes = [8, 128], strides = [1, 1]} : vector<8x256xf32> to vector<8x128xf32>
    %c0_23 = arith.constant 0 : index
    %c0_24 = arith.constant 0 : index
    %44 = vector.load %arg2[%c0_23, %c0_24] : memref<8x128xf32, #tpu.memory_space<vmem>>, vector<8x128xf32>
    %cst_25 = arith.constant 5.000000e-01 : f32
    %45 = vector.broadcast %cst_25 : f32 to vector<8x128xf32>
    %46 = arith.mulf %45, %43 : vector<8x128xf32>
    %47 = math.exp %46 : vector<8x128xf32>
    %48 = arith.mulf %44, %47 : vector<8x128xf32>
    %49 = arith.addf %42, %48 : vector<8x128xf32>
    %50 = arith.truncf %49 : vector<8x128xf32> to vector<8x128xbf16>
    %c0_26 = arith.constant 0 : index
    %c0_27 = arith.constant 0 : index
    %51 = vector.load %arg9[%c0_26, %c0_27] : memref<128x128xbf16, #tpu.memory_space<vmem>>, vector<128x128xbf16>
    %cst_28 = arith.constant dense<0.000000e+00> : vector<8x128xf32>
    %52 = tpu.matmul %50, %51, %cst_28 {dimension_numbers = #tpu.dot_dimension_numbers<[1], [0], [0], [1], [0, 0, 1, 1], [], []>} : vector<8x128xbf16>, vector<128x128xbf16>, vector<8x128xf32> -> vector<8x128xf32>
    %c0_29 = arith.constant 0 : index
    %c0_30 = arith.constant 0 : index
    %53 = vector.load %arg10[%c0_29, %c0_30] : memref<1x128xf32, #tpu.memory_space<vmem>>, vector<1x128xf32>
    %54 = vector.broadcast %53 : vector<1x128xf32> to vector<8x128xf32>
    %55 = arith.addf %52, %54 : vector<8x128xf32>
    %c0_31 = arith.constant 0 : index
    %c0_32 = arith.constant 0 : index
    %56 = vector.load %arg11[%c0_31, %c0_32] : memref<1x128xf32, #tpu.memory_space<vmem>>, vector<1x128xf32>
    %c0_33 = arith.constant 0 : index
    %c0_34 = arith.constant 0 : index
    %57 = vector.load %arg12[%c0_33, %c0_34] : memref<1x128xf32, #tpu.memory_space<vmem>>, vector<1x128xf32>
    %cst_35 = arith.constant dense<0.000000e+00> : vector<8xf32>
    %58 = vector.multi_reduction <add>, %55, %cst_35 [1] : vector<8x128xf32> to vector<8xf32>
    %59 = vector.shape_cast %58 : vector<8xf32> to vector<8x1xf32>
    %60 = arith.mulf %55, %55 : vector<8x128xf32>
    %cst_36 = arith.constant dense<0.000000e+00> : vector<8xf32>
    %61 = vector.multi_reduction <add>, %60, %cst_36 [1] : vector<8x128xf32> to vector<8xf32>
    %62 = vector.shape_cast %61 : vector<8xf32> to vector<8x1xf32>
    %cst_37 = arith.constant 7.812500e-03 : f32
    %63 = vector.broadcast %cst_37 : f32 to vector<8x1xf32>
    %64 = arith.mulf %59, %63 : vector<8x1xf32>
    %cst_38 = arith.constant 7.812500e-03 : f32
    %65 = vector.broadcast %cst_38 : f32 to vector<8x1xf32>
    %66 = arith.mulf %62, %65 : vector<8x1xf32>
    %67 = arith.mulf %64, %64 : vector<8x1xf32>
    %68 = arith.subf %66, %67 : vector<8x1xf32>
    %69 = vector.broadcast %64 : vector<8x1xf32> to vector<8x128xf32>
    %70 = arith.subf %55, %69 : vector<8x128xf32>
    %cst_39 = arith.constant 9.99999974E-6 : f32
    %71 = vector.broadcast %cst_39 : f32 to vector<8x1xf32>
    %72 = arith.addf %68, %71 : vector<8x1xf32>
    %73 = math.rsqrt %72 : vector<8x1xf32>
    %74 = vector.broadcast %73 : vector<8x1xf32> to vector<8x128xf32>
    %75 = arith.mulf %70, %74 : vector<8x128xf32>
    %76 = vector.broadcast %56 : vector<1x128xf32> to vector<8x128xf32>
    %77 = arith.mulf %75, %76 : vector<8x128xf32>
    %78 = vector.broadcast %57 : vector<1x128xf32> to vector<8x128xf32>
    %79 = arith.addf %77, %78 : vector<8x128xf32>
    %cst_40 = arith.constant 0.000000e+00 : f32
    %80 = vector.broadcast %cst_40 : f32 to vector<8x128xf32>
    %81 = arith.cmpf ogt, %79, %80 : vector<8x128xf32>
    %cst_41 = arith.constant 0.00999999977 : f32
    %82 = vector.broadcast %cst_41 : f32 to vector<8x128xf32>
    %83 = arith.mulf %82, %79 : vector<8x128xf32>
    %84 = arith.select %81, %79, %83 : vector<8x128xi1>, vector<8x128xf32>
    %85 = arith.truncf %84 : vector<8x128xf32> to vector<8x128xbf16>
    %c0_42 = arith.constant 0 : index
    %c0_43 = arith.constant 0 : index
    %86 = vector.load %arg13[%c0_42, %c0_43] : memref<128x256xbf16, #tpu.memory_space<vmem>>, vector<128x256xbf16>
    %cst_44 = arith.constant dense<0.000000e+00> : vector<8x256xf32>
    %87 = tpu.matmul %85, %86, %cst_44 {dimension_numbers = #tpu.dot_dimension_numbers<[1], [0], [0], [1], [0, 0, 1, 1], [], []>} : vector<8x128xbf16>, vector<128x256xbf16>, vector<8x256xf32> -> vector<8x256xf32>
    %c0_45 = arith.constant 0 : index
    %c0_46 = arith.constant 0 : index
    %88 = vector.load %arg14[%c0_45, %c0_46] : memref<1x256xf32, #tpu.memory_space<vmem>>, vector<1x256xf32>
    %89 = vector.broadcast %88 : vector<1x256xf32> to vector<8x256xf32>
    %90 = arith.addf %87, %89 : vector<8x256xf32>
    %c0_47 = arith.constant 0 : index
    %c0_48 = arith.constant 0 : index
    %91 = vector.load %arg15[%c0_47, %c0_48] : memref<8x256xf32, #tpu.memory_space<vmem>>, vector<8x256xf32>
    tpu.vector_store %arg15[%c0_47, %c0_48], %90 {strides = array<i32>} : memref<8x256xf32, #tpu.memory_space<vmem>>, vector<8x256xf32>,
    return
  }
  func.func @transform_0(%arg0: i32) -> (i32, i32) {
    %c0_i32 = arith.constant 0 : i32
    %c0_i32_0 = arith.constant 0 : i32
    return %arg0, %c0_i32 : i32, i32
  }
  func.func @transform_1(%arg0: i32) -> (i32, i32) {
    %c0_i32 = arith.constant 0 : i32
    %c0_i32_0 = arith.constant 0 : i32
    return %arg0, %c0_i32 : i32, i32
  }
  func.func @transform_2(%arg0: i32) -> (i32, i32) {
    %c0_i32 = arith.constant 0 : i32
    %c0_i32_0 = arith.constant 0 : i32
    %c0_i32_1 = arith.constant 0 : i32
    return %c0_i32, %c0_i32_0 : i32, i32
  }
  func.func @transform_3(%arg0: i32) -> (i32, i32) {
    %c0_i32 = arith.constant 0 : i32
    %c0_i32_0 = arith.constant 0 : i32
    %c0_i32_1 = arith.constant 0 : i32
    return %c0_i32, %c0_i32_0 : i32, i32
  }
  func.func @transform_4(%arg0: i32) -> (i32, i32) {
    %c0_i32 = arith.constant 0 : i32
    %c0_i32_0 = arith.constant 0 : i32
    %c0_i32_1 = arith.constant 0 : i32
    return %c0_i32, %c0_i32_0 : i32, i32
  }
  func.func @transform_5(%arg0: i32) -> (i32, i32) {
    %c0_i32 = arith.constant 0 : i32
    %c0_i32_0 = arith.constant 0 : i32
    %c0_i32_1 = arith.constant 0 : i32
    return %c0_i32, %c0_i32_0 : i32, i32
  }
  func.func @transform_6(%arg0: i32) -> (i32, i32) {
    %c0_i32 = arith.constant 0 : i32
    %c0_i32_0 = arith.constant 0 : i32
    %c0_i32_1 = arith.constant 0 : i32
    return %c0_i32, %c0_i32_0 : i32, i32
  }
  func.func @transform_7(%arg0: i32) -> (i32, i32) {
    %c0_i32 = arith.constant 0 : i32
    %c0_i32_0 = arith.constant 0 : i32
    %c0_i32_1 = arith.constant 0 : i32
    return %c0_i32, %c0_i32_0 : i32, i32
  }
  func.func @transform_8(%arg0: i32) -> (i32, i32) {
    %c0_i32 = arith.constant 0 : i32
    %c0_i32_0 = arith.constant 0 : i32
    %c0_i32_1 = arith.constant 0 : i32
    return %c0_i32, %c0_i32_0 : i32, i32
  }
  func.func @transform_9(%arg0: i32) -> (i32, i32) {
    %c0_i32 = arith.constant 0 : i32
    %c0_i32_0 = arith.constant 0 : i32
    %c0_i32_1 = arith.constant 0 : i32
    return %c0_i32, %c0_i32_0 : i32, i32
  }
  func.func @transform_10(%arg0: i32) -> (i32, i32) {
    %c0_i32 = arith.constant 0 : i32
    %c0_i32_0 = arith.constant 0 : i32
    %c0_i32_1 = arith.constant 0 : i32
    return %c0_i32, %c0_i32_0 : i32, i32
  }
  func.func @transform_11(%arg0: i32) -> (i32, i32) {
    %c0_i32 = arith.constant 0 : i32
    %c0_i32_0 = arith.constant 0 : i32
    %c0_i32_1 = arith.constant 0 : i32
    return %c0_i32, %c0_i32_0 : i32, i32
  }
  func.func @transform_12(%arg0: i32) -> (i32, i32) {
    %c0_i32 = arith.constant 0 : i32
    %c0_i32_0 = arith.constant 0 : i32
    %c0_i32_1 = arith.constant 0 : i32
    return %c0_i32, %c0_i32_0 : i32, i32
  }
  func.func @transform_13(%arg0: i32) -> (i32, i32) {
    %c0_i32 = arith.constant 0 : i32
    %c0_i32_0 = arith.constant 0 : i32
    %c0_i32_1 = arith.constant 0 : i32
    return %c0_i32, %c0_i32_0 : i32, i32
  }
  func.func @transform_14(%arg0: i32) -> (i32, i32) {
    %c0_i32 = arith.constant 0 : i32
    %c0_i32_0 = arith.constant 0 : i32
    return %arg0, %c0_i32 : i32, i32
  }
  func.func @transform_15(%arg0: i32) -> (i32, i32) {
    %c0_i32 = arith.constant 0 : i32
    %c0_i32_0 = arith.constant 0 : i32
    return %arg0, %c0_i32 : i32, i32
  }
}

</mosaic_0001>

<bundles_post_ra>
// kernel: beta_vae_forward.1
= control target key start
LH: loop header
LB: loop body
LE: loop exit
PB: predicated region body
PF: predicated region fallthrough
CT: control target
= control target key end

     0   :  { %s1371_s0 = inlined_call_operand.vmem [shape: bf16[8,256], index: 0, kind: input, shape index: {}]   ;;  %s1372_s1 = inlined_call_operand.vmem [shape: f32[8,128], index: 1, kind: input, shape index: {}]   ;;  %s1373_s2 = inlined_call_operand.vmem [shape: bf16[256,128], index: 2, kind: input, shape index: {}]   ;;  %s1374_s3 = inlined_call_operand.vmem [shape: f32[1,128], index: 3, kind: input, shape index: {}]   ;;  %s1375_s4 = inlined_call_operand.vmem [shape: f32[1,128], index: 4, kind: input, shape index: {}]   ;;  %s1376_s5 = inlined_call_operand.vmem [shape: f32[1,128], index: 5, kind: input, shape index: {}]   ;;  %s1377_s6 = inlined_call_operand.vmem [shape: bf16[128,256], index: 6, kind: input, shape index: {}]   ;;  %s1378_s7 = inlined_call_operand.vmem [shape: f32[1,256], index: 7, kind: input, shape index: {}]   ;;  %s1379_s8 = inlined_call_operand.vmem [shape: bf16[128,128], index: 8, kind: input, shape index: {}]   ;;  %s1380_s9 = inlined_call_operand.vmem [shape: f32[1,128], index: 9, kind: input, shape index: {}]   ;;  %s1381_s10 = inlined_call_operand.vmem [shape: f32[1,128], index: 10, kind: input, shape index: {}]   ;;  %s1382_s11 = inlined_call_operand.vmem [shape: f32[1,128], index: 11, kind: input, shape index: {}]   ;;  %s1383_s12 = inlined_call_operand.vmem [shape: bf16[128,256], index: 12, kind: input, shape index: {}]   ;;  %s1384_s13 = inlined_call_operand.vmem [shape: f32[1,256], index: 13, kind: input, shape index: {}]   ;;  %s1385_s14 = inlined_call_operand.hbm [shape: f32[8,256], index: 14, kind: output, shape index: {0}]   ;;  %s1386_s15 = inlined_call_operand.vmem [shape: f32[8,256], index: 15, kind: output, shape index: {1}]  }
   0x1   :  { %v887_v0 = vld [vmem:[%s1373_s2 + $0x38] sm:$0xff]  ;;  %v886_v2 = vld [vmem:[%s1373_s2 + $0x30] sm:$0xff]  ;;  %v885_v4 = vld [vmem:[%s1373_s2 + $0x28] sm:$0xff] }
   0x2   :  { %v895_v1 = vld [vmem:[%s1373_s2 + $0x78] sm:$0xff]  ;;  %190 = vmatpush.bf16.msra.mxu0 %v887_v0  ;;  %v894_v3 = vld [vmem:[%s1373_s2 + $0x70] sm:$0xff]  ;;  %v893_v5 = vld [vmem:[%s1373_s2 + $0x68] sm:$0xff] }
   0x3   :  { %203 = vmatpush.bf16.msra.mxu1 %v895_v1 }
   0x6   :  { %191 = vmatpush.bf16.msra.mxu0 %v886_v2 }
   0x7   :  { %204 = vmatpush.bf16.msra.mxu1 %v894_v3 }
   0x8   :  { %21 = vsyncpa [#allocation3], 0  ;;  %v884_v6 = vld [vmem:[%s1373_s2 + $0x20] sm:$0xff]  ;;  %v883_v8 = vld [vmem:[%s1373_s2 + $0x18] sm:$0xff]  ;;  %s643_s18 = sshll.u32 %s1385_s14, 4  ;;  %s644_s18 = int_to_ptr.hbm [resolvable:$true] %s643_s18 }
   0x9   :  { %v892_v7 = vld [vmem:[%s1373_s2 + $0x60] sm:$0xff]  ;;  %v891_v9 = vld [vmem:[%s1373_s2 + $0x58] sm:$0xff]  ;;  %v882_v10 = vld [vmem:[%s1373_s2 + $0x10] sm:$0xff] }
   0xa   :  { %192 = vmatpush.bf16.msra.mxu0 %v885_v4  ;;  %v890_v11 = vld [vmem:[%s1373_s2 + $0x50] sm:$0xff]  ;;  %v881_v12 = vld [vmem:[%s1373_s2 + $0x8] sm:$0xff]  ;;  %v50_v14 = vld [vmem:[%s1371_s0] sm:$0xff] }
   0xb   :  { %205 = vmatpush.bf16.msra.mxu1 %v893_v5  ;;  %v889_v13 = vld [vmem:[%s1373_s2 + $0x48] sm:$0xff]  ;;  %v88_v15 = vunpack.c.l.b16 %v50_v14  ;;  %v89_v16 = vunpack.c.h.b16 %v50_v14  ;;  %v880_v17 = vld [vmem:[%s1373_s2] sm:$0xff]  ;;  %v778_v29 = vld [vmem:[%s1377_s6 + $0x70] sm:$0xf] }
   0xc   :  { %v888_v18 = vld [vmem:[%s1373_s2 + $0x40] sm:$0xff]  ;;  %v911_v30 = vld [vmem:[%s1377_s6 + $0x74] sm:$0xf0]  ;;  %v910_v31 = vld [vmem:[%s1377_s6 + $0x74] sm:$0xf] }
   0xd   :  { %v90_v19 = vpack.c.b16 %v88_v15, %v88_v15  ;;  %v91_v20 = vpack.c.b16 %v89_v16, %v89_v16  ;;  %v937_v21 = vld [vmem:[%s1374_s3] ss:$0 sm:$0xff]  ;;  %v779_v32 = vor.u32 %v911_v30, %v778_v29  ;;  %v780_v33 = vld [vmem:[%s1377_s6 + $0x78] sm:$0xf0]  ;;  %v909_v36 = vld [vmem:[%s1377_s6 + $0x64] sm:$0xf0] }
   0xe   :  { %193 = vmatpush.bf16.msra.mxu0 %v884_v6  ;;  %v783_v34 = vor.u32 %v910_v31, %v780_v33  ;;  %v770_v35 = vld [vmem:[%s1377_s6 + $0x60] sm:$0xf]  ;;  %v908_v37 = vld [vmem:[%s1377_s6 + $0x64] sm:$0xf]  ;;  %v772_v39 = vld [vmem:[%s1377_s6 + $0x68] sm:$0xf0] }
   0xf   :  { %206 = vmatpush.bf16.msra.mxu1 %v892_v7  ;;  %354 = vmatpush.bf16.msra.mxu2 %v779_v32  ;;  %v771_v38 = vor.u32 %v909_v36, %v770_v35  ;;  %v775_v40 = vor.u32 %v908_v37, %v772_v39  ;;  %v762_v41 = vld [vmem:[%s1377_s6 + $0x50] sm:$0xf]  ;;  %v907_v42 = vld [vmem:[%s1377_s6 + $0x54] sm:$0xf0]  ;;  %v906_v43 = vld [vmem:[%s1377_s6 + $0x54] sm:$0xf] }
  0x10   :  { %367 = vmatpush.bf16.msra.mxu3 %v783_v34  ;;  %v763_v44 = vor.u32 %v907_v42, %v762_v41  ;;  %v764_v45 = vld [vmem:[%s1377_s6 + $0x58] sm:$0xf0]  ;;  %v754_v47 = vld [vmem:[%s1377_s6 + $0x40] sm:$0xf]  ;;  %v905_v48 = vld [vmem:[%s1377_s6 + $0x44] sm:$0xf0] }
  0x11   :  { %v767_v46 = vor.u32 %v906_v43, %v764_v45  ;;  %v904_v49 = vld [vmem:[%s1377_s6 + $0x44] sm:$0xf]  ;;  %v755_v50 = vor.u32 %v905_v48, %v754_v47  ;;  %v756_v51 = vld [vmem:[%s1377_s6 + $0x48] sm:$0xf0]  ;;  %v746_v53 = vld [vmem:[%s1377_s6 + $0x30] sm:$0xf] }
  0x12   :  { %194 = vmatpush.bf16.msra.mxu0 %v883_v8  ;;  %v759_v52 = vor.u32 %v904_v49, %v756_v51  ;;  %v903_v54 = vld [vmem:[%s1377_s6 + $0x34] sm:$0xf0]  ;;  %v902_v55 = vld [vmem:[%s1377_s6 + $0x34] sm:$0xf]  ;;  %v748_v57 = vld [vmem:[%s1377_s6 + $0x38] sm:$0xf0] }
  0x13   :  { %207 = vmatpush.bf16.msra.mxu1 %v891_v9  ;;  %355 = vmatpush.bf16.msra.mxu2 %v771_v38  ;;  %v747_v56 = vor.u32 %v903_v54, %v746_v53  ;;  %v751_v58 = vor.u32 %v902_v55, %v748_v57  ;;  %v738_v59 = vld [vmem:[%s1377_s6 + $0x20] sm:$0xf]  ;;  %v901_v60 = vld [vmem:[%s1377_s6 + $0x24] sm:$0xf0]  ;;  %v900_v61 = vld [vmem:[%s1377_s6 + $0x24] sm:$0xf] }
  0x14   :  { %368 = vmatpush.bf16.msra.mxu3 %v775_v40  ;;  %v739_v62 = vor.u32 %v901_v60, %v738_v59  ;;  %v740_v63 = vld [vmem:[%s1377_s6 + $0x28] sm:$0xf0]  ;;  %v730_v2 = vld [vmem:[%s1377_s6 + $0x10] sm:$0xf]  ;;  %v899_v3 = vld [vmem:[%s1377_s6 + $0x14] sm:$0xf0] }
  0x15   :  { %v743_v1 = vor.u32 %v900_v61, %v740_v63  ;;  %v898_v4 = vld [vmem:[%s1377_s6 + $0x14] sm:$0xf]  ;;  %v731_v5 = vor.u32 %v899_v3, %v730_v2  ;;  %v732_v6 = vld [vmem:[%s1377_s6 + $0x18] sm:$0xf0]  ;;  %v722_v8 = vld [vmem:[%s1377_s6] sm:$0xf] }
  0x16   :  { %195 = vmatpush.bf16.msra.mxu0 %v882_v10  ;;  %v735_v7 = vor.u32 %v898_v4, %v732_v6  ;;  %v897_v9 = vld [vmem:[%s1377_s6 + $0x4] sm:$0xf0]  ;;  %v896_v10 = vld [vmem:[%s1377_s6 + $0x4] sm:$0xf]  ;;  %v938_v31 = vld [vmem:[%s1375_s4] ss:$0 sm:$0xff] }
  0x17   :  { %208 = vmatpush.bf16.msra.mxu1 %v890_v11  ;;  %356 = vmatpush.bf16.msra.mxu2 %v763_v44  ;;  %v724_v11 = vld [vmem:[%s1377_s6 + $0x8] sm:$0xf0]  ;;  %v939_v34 = vld [vmem:[%s1376_s5] ss:$0 sm:$0xff]  ;;  %v915_v40 = vld [vmem:[%s1379_s8 + $0x18] sm:$0xff] }
  0x18   :  { %369 = vmatpush.bf16.msra.mxu3 %v767_v46  ;;  %v727_v14 = vor.u32 %v896_v10, %v724_v11  ;;  %v914_v41 = vld [vmem:[%s1379_s8 + $0x10] sm:$0xff]  ;;  %v913_v42 = vld [vmem:[%s1379_s8 + $0x8] sm:$0xff]  ;;  %v912_v43 = vld [vmem:[%s1379_s8] sm:$0xff] }
  0x19   :  { %v268_v44 = vld [vmem:[%s1378_s7] sm:$0x3]  ;;  %v935_v2 = vld [vmem:[%s1383_s12 + $0x74] sm:$0xf0]  ;;  %v934_v3 = vld [vmem:[%s1383_s12 + $0x74] sm:$0xf] }
  0x1a   :  { %196 = vmatpush.bf16.msra.mxu0 %v881_v12  ;;  %v270_v45 = vperm.slane %v268_v44, 0  ;;  %v271_v46 = vperm.slane %v268_v44, 1  ;;  %v382_v55 = vld [vmem:[%s1372_s1] sm:$0xff]  ;;  %v868_v11 = vld [vmem:[%s1383_s12 + $0x68] sm:$0xf0] }
  0x1b   :  { %209 = vmatpush.bf16.msra.mxu1 %v889_v13  ;;  %357 = vmatpush.bf16.msra.mxu2 %v755_v50  ;;  %v723_v13 = vor.u32 %v897_v9, %v722_v8  ;;  %v940_v60 = vld [vmem:[%s1380_s9] ss:$0 sm:$0xff]  ;;  %v933_v8 = vld [vmem:[%s1383_s12 + $0x64] sm:$0xf0]  ;;  %v932_v9 = vld [vmem:[%s1383_s12 + $0x64] sm:$0xf] }
  0x1c   :  { %370 = vmatpush.bf16.msra.mxu3 %v759_v52  ;;  %v818_v44 = vld [vmem:[%s1383_s12] sm:$0xf] }
  0x1e   :  { %197 = vmatpush.bf16.msra.mxu0 %v880_v17 }
  0x1f   :  { %210 = vmatpush.bf16.msra.mxu1 %v888_v18  ;;  %358 = vmatpush.bf16.msra.mxu2 %v747_v56 }
  0x20   :  { %371 = vmatpush.bf16.msra.mxu3 %v751_v58 }
  0x21   :  { %198 = vmatmul.bf16.vlgmr.msra.gmra.mxu0 %v90_v19  ;;  %v919_v19 = vld [vmem:[%s1379_s8 + $0x38] sm:$0xff] }
  0x22   :  { %211 = vmatmul.bf16.vlgmr.msra.gmra.mxu1 %v91_v20  ;;  %457 = vmatpush.bf16.msrb.mxu0 %v919_v19  ;;  %v850_v19 = vld [vmem:[%s1383_s12 + $0x40] sm:$0xf] }
  0x23   :  { %359 = vmatpush.bf16.msra.mxu2 %v739_v62 }
  0x24   :  { %372 = vmatpush.bf16.msra.mxu3 %v743_v1  ;;  %v874_v1 = vld [vmem:[%s1383_s12 + $0x70] sm:$0xf] }
  0x25   :  { %v875_v4 = vor.u32 %v935_v2, %v874_v1 }
  0x27   :  { %360 = vmatpush.bf16.msra.mxu2 %v731_v5  ;;  %v876_v5 = vld [vmem:[%s1383_s12 + $0x78] sm:$0xf0]  ;;  %608 = vmatpush.bf16.msrb.mxu1 %v875_v4 }
  0x28   :  { %373 = vmatpush.bf16.msra.mxu3 %v735_v7  ;;  %v879_v6 = vor.u32 %v934_v3, %v876_v5  ;;  %v866_v7 = vld [vmem:[%s1383_s12 + $0x60] sm:$0xf] }
  0x29   :  { %v867_v10 = vor.u32 %v933_v8, %v866_v7  ;;  %v942_v3 = vld [vmem:[%s1382_s11] ss:$0 sm:$0xff] }
  0x2b   :  { %361 = vmatpush.bf16.msra.mxu2 %v723_v13  ;;  %609 = vmatpush.bf16.msrb.mxu1 %v867_v10  ;;  %v858_v13 = vld [vmem:[%s1383_s12 + $0x50] sm:$0xf] }
  0x2c   :  { %374 = vmatpush.bf16.msra.mxu3 %v727_v14  ;;  %v931_v14 = vld [vmem:[%s1383_s12 + $0x54] sm:$0xf0] }
  0x2f   :  { %621 = vmatpush.bf16.msrb.mxu2 %v879_v6 }
  0x9e   :  { %v199_v22 = vpop.f32.mrf.mxu0 }
  0x9f   :  { %v212_v23 = vpop.f32.mrf.mxu1  ;;  %v200_v24 = vadd.f32 %v937_v21, %v199_v22  ;;  %v918_v21 = vld [vmem:[%s1379_s8 + $0x30] sm:$0xff]  ;;  %v917_v22 = vld [vmem:[%s1379_s8 + $0x28] sm:$0xff] }
  0xa0   :  { %458 = vmatpush.bf16.msrb.mxu0 %v918_v21  ;;  %v928_v21 = vld [vmem:[%s1383_s12 + $0x44] sm:$0xf] }
  0xa1   :  { %v1110_v25 = vadd.f32 %v212_v23, %v200_v24 }
  0xa3   :  { %218 = vadd.xlane.f32.xlu0 %v1110_v25  ;;  %v220_v28 = vmul.f32 %v1110_v25, %v1110_v25 }
  0xa4   :  { %459 = vmatpush.bf16.msrb.mxu0 %v917_v22 }
  0xa6   :  { %v201_v26 = vpop.f32.mrf.mxu0 }
  0xa7   :  { %v214_v27 = vpop.f32.mrf.mxu1 }
  0xab   :  { %221 = vadd.xlane.f32.xlu0 %v220_v28 }
 0x116   :  { %v219_v0 = vpop.xlane.xlu0 %218 }
 0x117   :  { %v223_v12 = vmul.f32 0.0078125, %v219_v0 }
 0x119   :  { %v225_v16 = vmul.f32 %v223_v12, %v223_v12  ;;  %v227_v30 = vsub.f32 %v1110_v25, %v223_v12  ;;  %v916_v25 = vld [vmem:[%s1379_s8 + $0x20] sm:$0xff]  ;;  %v871_v12 = vor.u32 %v932_v9, %v868_v11 }
 0x11a   :  { %460 = vmatpush.bf16.msrb.mxu0 %v916_v25  ;;  %v923_v25 = vld [vmem:[%s1383_s12 + $0x14] sm:$0xf0] }
 0x11b   :  { %622 = vmatpush.bf16.msrb.mxu2 %v871_v12 }
 0x11e   :  { %v222_v15 = vpop.xlane.xlu0 %221  ;;  %461 = vmatpush.bf16.msrb.mxu0 %v915_v40 }
 0x11f   :  { %v224_v17 = vmul.f32 0.0078125, %v222_v15  ;;  %v930_v15 = vld [vmem:[%s1383_s12 + $0x54] sm:$0xf] }
 0x121   :  { %v226_v18 = vsub.f32 %v224_v17, %v225_v16  ;;  %v859_v16 = vor.u32 %v931_v14, %v858_v13  ;;  %v860_v17 = vld [vmem:[%s1383_s12 + $0x58] sm:$0xf0] }
 0x122   :  { %462 = vmatpush.bf16.msrb.mxu0 %v914_v41  ;;  %v922_v41 = vld [vmem:[%s1383_s12 + $0x14] sm:$0xf] }
 0x123   :  { %v228_v20 = vadd.f32 1e-05, %v226_v18  ;;  %v863_v18 = vor.u32 %v930_v15, %v860_v17  ;;  %610 = vmatpush.bf16.msrb.mxu1 %v859_v16 }
 0x125   :  { %943 = vrsqrt.f32 %v228_v20  ;;  %vm235_vm1 = vweird.f32 %v228_v20  ;;  %623 = vmatpush.bf16.msrb.mxu2 %v863_v18 }
 0x126   :  { %463 = vmatpush.bf16.msrb.mxu0 %v913_v42  ;;  %v828_v42 = vld [vmem:[%s1383_s12 + $0x18] sm:$0xf0] }
 0x12a   :  { %464 = vmatpush.bf16.msrb.mxu0 %v912_v43  ;;  %v831_v43 = vor.u32 %v922_v41, %v828_v42 }
 0x12b   :  { %v944_v23 = vpop.eup %943 }
 0x12c   :  { %v230_v24 = vmul.f32 %v944_v23, %v228_v20  ;;  %vm236_vm0 = vweird.f32 %v944_v23  ;;  %v929_v20 = vld [vmem:[%s1383_s12 + $0x44] sm:$0xf0] }
 0x12d   :  { %vm237_vm2 = vmor %vm235_vm1, %vm236_vm0  ;;  %v851_v22 = vor.u32 %v929_v20, %v850_v19 }
 0x12e   :  { %v231_v26 = vmul.f32 %v944_v23, %v230_v24 }
 0x12f   :  { %611 = vmatpush.bf16.msrb.mxu1 %v851_v22 }
 0x130   :  { %v232_v27 = vmul.f32 0.5, %v231_v26  ;;  %v842_v26 = vld [vmem:[%s1383_s12 + $0x30] sm:$0xf] }
 0x132   :  { %v233_v28 = vsub.f32 1.5, %v232_v27  ;;  %v927_v27 = vld [vmem:[%s1383_s12 + $0x34] sm:$0xf0] }
 0x134   :  { %v234_v29 = vmul.f32 %v944_v23, %v233_v28  ;;  %v926_v28 = vld [vmem:[%s1383_s12 + $0x34] sm:$0xf] }
 0x136   :  { %v238_v32 = vsel %vm237_vm2, %v944_v23, %v234_v29  ;;  %v852_v23 = vld [vmem:[%s1383_s12 + $0x48] sm:$0xf0]  ;;  %v843_v29 = vor.u32 %v927_v27, %v842_v26 }
 0x137   :  { %v239_v33 = vmul.f32 %v238_v32, %v227_v30  ;;  %v855_v24 = vor.u32 %v928_v21, %v852_v23  ;;  %v844_v30 = vld [vmem:[%s1383_s12 + $0x38] sm:$0xf0]  ;;  %v834_v32 = vld [vmem:[%s1383_s12 + $0x20] sm:$0xf] }
 0x138   :  { %612 = vmatpush.bf16.msrb.mxu1 %v843_v29 }
 0x139   :  { %v243_v35 = vmul.f32 %v938_v31, %v239_v33  ;;  %624 = vmatpush.bf16.msrb.mxu2 %v855_v24  ;;  %v847_v31 = vor.u32 %v926_v28, %v844_v30  ;;  %v925_v33 = vld [vmem:[%s1383_s12 + $0x24] sm:$0xf0] }
 0x13b   :  { %v247_v36 = vadd.f32 %v939_v34, %v243_v35  ;;  %v924_v34 = vld [vmem:[%s1383_s12 + $0x24] sm:$0xf] }
 0x13d   :  { %vm248_vm3 = vcmp.gt.f32.partialorder %v247_v36, 0.0  ;;  %v249_v37 = vmul.f32 0.01, %v247_v36  ;;  %625 = vmatpush.bf16.msrb.mxu2 %v847_v31 }
 0x13f   :  { %v250_v38 = vsel %vm248_vm3, %v247_v36, %v249_v37  ;;  %v835_v36 = vor.u32 %v925_v33, %v834_v32  ;;  %v836_v37 = vld [vmem:[%s1383_s12 + $0x28] sm:$0xf0] }
 0x140   :  { %v251_v39 = vpack.c.bf16 %v250_v38, %v250_v38  ;;  %v839_v38 = vor.u32 %v924_v34, %v836_v37 }
 0x141   :  { %613 = vmatpush.bf16.msrb.mxu1 %v835_v36 }
 0x142   :  { %362 = vmatmul.bf16.vlgmr.msra.gmra.mxu2 %v251_v39  ;;  %375 = vmatmul.bf16.vlgmr.msra.gmra.mxu3 %v251_v39  ;;  %v826_v39 = vld [vmem:[%s1383_s12 + $0x10] sm:$0xf] }
 0x143   :  { %v827_v40 = vor.u32 %v923_v25, %v826_v39  ;;  %626 = vmatpush.bf16.msrb.mxu2 %v839_v38 }
 0x145   :  { %614 = vmatpush.bf16.msrb.mxu1 %v827_v40 }
 0x147   :  { %627 = vmatpush.bf16.msrb.mxu2 %v831_v43 }
 0x1c5   :  { %v363_v47 = vpop.f32.mrf.mxu2  ;;  %v376_v48 = vpop.f32.mrf.mxu3 }
 0x1c6   :  { %v364_v49 = vadd.f32 %v363_v47, %v270_v45  ;;  %v377_v50 = vadd.f32 %v376_v48, %v271_v46  ;;  %v921_v45 = vld [vmem:[%s1383_s12 + $0x4] sm:$0xf0]  ;;  %v920_v46 = vld [vmem:[%s1383_s12 + $0x4] sm:$0xf]  ;;  %v820_v47 = vld [vmem:[%s1383_s12 + $0x8] sm:$0xf0] }
 0x1c8   :  { %380 = vst [vmem:[%s1386_s15] sm:$0xff] %v364_v49  ;;  %v383_v51 = vmul.f32 0.5, %v377_v50 }
 0x1c9   :  { %381 = vst [vmem:[%s1386_s15 + $0x8] sm:$0xff] %v377_v50  ;;  %v823_v50 = vor.u32 %v920_v46, %v820_v47 }
 0x1ca   :  { %v384_v52 = vmul.f32 1.442695, %v383_v51 }
 0x1cb   :  { %628 = vmatpush.bf16.msrb.mxu2 %v823_v50 }
 0x1cc   :  { %945 = vpow2.f32 %v384_v52 }
 0x1cd   :  { %v365_v53 = vpop.f32.mrf.mxu2  ;;  %v378_v54 = vpop.f32.mrf.mxu3 }
 0x1d2   :  { %v946_v56 = vpop.eup %945 }
 0x1d3   :  { %v386_v57 = vmul.f32 %v946_v56, %v382_v55 }
 0x1d5   :  { %v387_v58 = vadd.f32 %v386_v57, %v364_v49  ;;  %v819_v49 = vor.u32 %v921_v45, %v818_v44 }
 0x1d7   :  { %v388_v59 = vpack.c.bf16 %v387_v58, %v387_v58  ;;  %615 = vmatpush.bf16.msrb.mxu1 %v819_v49 }
 0x1d9   :  { %465 = vmatmul.bf16.vlgmr.msrb.gmra.mxu0 %v388_v59 }
 0x256   :  { %v466_v61 = vpop.f32.mrf.mxu0 }
 0x257   :  { %v1257_v62 = vadd.f32 %v940_v60, %v466_v61 }
 0x259   :  { %472 = vadd.xlane.f32.xlu1 %v1257_v62  ;;  %v474_v0 = vmul.f32 %v1257_v62, %v1257_v62 }
 0x25e   :  { %v468_v63 = vpop.f32.mrf.mxu0 }
 0x261   :  { %475 = vadd.xlane.f32.xlu1 %v474_v0  ;;  %v941_v0 = vld [vmem:[%s1381_s10] ss:$0 sm:$0xff]  ;;  %s975_s10 = smov [#allocation2]  }
 0x262   :  { %s641_s16 = sshll.u32 %s975_s10, 4  ;;  %s642_s16 = int_to_ptr.vmem [resolvable:$true] %s641_s16 }
 0x2cc   :  { %v473_v35 = vpop.xlane.xlu1 %472 }
 0x2cd   :  { %v477_v48 = vmul.f32 0.0078125, %v473_v35 }
 0x2cf   :  { %v479_v52 = vmul.f32 %v477_v48, %v477_v48  ;;  %v481_v63 = vsub.f32 %v1257_v62, %v477_v48  ;;  %v522_v62 = vld [vmem:[%s1384_s13] sm:$0x3] }
 0x2d0   :  { %v524_v9 = vperm.slane %v522_v62, 0  ;;  %v525_v12 = vperm.slane %v522_v62, 1 }
 0x2d4   :  { %v476_v51 = vpop.xlane.xlu1 %475 }
 0x2d5   :  { %v478_v53 = vmul.f32 0.0078125, %v476_v51 }
 0x2d7   :  { %v480_v54 = vsub.f32 %v478_v53, %v479_v52 }
 0x2d9   :  { %v482_v55 = vadd.f32 1e-05, %v480_v54 }
 0x2db   :  { %947 = vrsqrt.f32 %v482_v55  ;;  %vm489_vm5 = vweird.f32 %v482_v55 }
 0x2e1   :  { %v948_v56 = vpop.eup %947 }
 0x2e2   :  { %v484_v57 = vmul.f32 %v948_v56, %v482_v55  ;;  %vm490_vm4 = vweird.f32 %v948_v56 }
 0x2e3   :  { %vm491_vm6 = vmor %vm489_vm5, %vm490_vm4 }
 0x2e4   :  { %v485_v58 = vmul.f32 %v948_v56, %v484_v57 }
 0x2e6   :  { %v486_v59 = vmul.f32 0.5, %v485_v58 }
 0x2e8   :  { %v487_v60 = vsub.f32 1.5, %v486_v59 }
 0x2ea   :  { %v488_v61 = vmul.f32 %v948_v56, %v487_v60 }
 0x2ec   :  { %v492_v1 = vsel %vm491_vm6, %v948_v56, %v488_v61 }
 0x2ed   :  { %v493_v2 = vmul.f32 %v492_v1, %v481_v63 }
 0x2ef   :  { %v497_v4 = vmul.f32 %v941_v0, %v493_v2 }
 0x2f1   :  { %v501_v5 = vadd.f32 %v942_v3, %v497_v4 }
 0x2f3   :  { %vm502_vm7 = vcmp.gt.f32.partialorder %v501_v5, 0.0  ;;  %v503_v6 = vmul.f32 0.01, %v501_v5 }
 0x2f5   :  { %v504_v7 = vsel %vm502_vm7, %v501_v5, %v503_v6 }
 0x2f6   :  { %v505_v8 = vpack.c.bf16 %v504_v7, %v504_v7 }
 0x2f8   :  { %616 = vmatmul.bf16.vlgmr.msrb.gmra.mxu1 %v505_v8  ;;  %629 = vmatmul.bf16.vlgmr.msrb.gmra.mxu2 %v505_v8 }
 0x375   :  { %v617_v10 = vpop.f32.mrf.mxu1 }
 0x376   :  { %v618_v11 = vadd.f32 %v617_v10, %v524_v9 }
 0x378   :  { %634 = vst [vmem:[#allocation2] sm:$0xff] %v618_v11 }
 0x37b   :  { %v630_v13 = vpop.f32.mrf.mxu2 }
 0x37c   :  { %v631_v14 = vadd.f32 %v630_v13, %v525_v12 }
 0x37d   :  { %v619_v15 = vpop.f32.mrf.mxu1 }
 0x37e   :  { %635 = vst [vmem:[#allocation2 + $0x8] sm:$0xff] %v631_v14 }
 0x37f   :  { %646 = dma.vmem_to_hbm [thread:$0]  %s642_s16, 256, %s644_s18, [#allocation3]  }
 0x383   :  { %v632_v16 = vpop.f32.mrf.mxu2 }
 0x384   :  { %973 = dma.done.wait [#allocation3], 256  }
 0x385   :  { %974 = vsyncadd [#allocation3], 4294967040 }
 0x386   :  { %655 = vsyncpa [#allocation3], 1 }

</bundles_post_ra>
